<compile_context>
chip_gen: v7x
topology: tpu7x:2x2x1
jax: 0.10.0
libtpu: 0.0.40
codegen_flags: <defaults>
</compile_context>

<pallas_src>
import jax
import jax.numpy as jnp
from jax.experimental import pallas as pl
from jax.experimental.pallas import tpu as pltpu


def _matmul_kernel(x_ref, w_ref, o_ref):
    # x_ref: (tile_m, K_pad)  im2col patches (+ ones column for the bias fold)
    # w_ref: (K_pad, N_pad)   reshaped conv weight (+ bias row), C_out padded to 128 lanes
    # o_ref: (tile_m, N_pad)  lane-dense output slab
    o_ref[...] = jnp.dot(
        x_ref[...], w_ref[...], preferred_element_type=jnp.float32
    ).astype(o_ref.dtype)


def _round_up(x, m):
    return (x + m - 1) // m * m


def _pick_tile_m(M):
    # Prefer >= 2 grid steps (both v7x TensorCores) with MXU-friendly strips.
    for cand in (512, 256, 128):
        if M % cand == 0 and M // cand >= 2:
            return cand
    return M  # single full-extent block (always legal as a BlockSpec)


def cnn_head_forward(x, weight, bias, *, window_size):
    """x: (B, window_size*window_size, C_in) -> (B, window_size*window_size, C_out).

    weight: HWIO (3, 3, C_in, C_out), bias: (C_out,).
    """
    B, L, C_in = x.shape
    H = W = window_size
    assert L == H * W
    C_out = weight.shape[-1]

    M = B * H * W
    K = 9 * C_in
    K_pad = _round_up(K + 1, 128)      # +1 column reserved for the bias fold
    N_pad = _round_up(C_out, 128)      # lane-dense output (unmasked stores)
    tile_m = _pick_tile_m(M)

    # --- plain-JAX glue: rearrange, reflect pad, im2col, bias fold ---------
    x_nhwc = x.reshape(B, H, W, C_in)
    x_pad = jnp.pad(x_nhwc, ((0, 0), (1, 1), (1, 1), (0, 0)), mode="reflect")
    # im2col: tap order (kh, kw) with C_in fastest -> matches weight.reshape(K, C_out)
    taps = [x_pad[:, kh:kh + H, kw:kw + W, :] for kh in range(3) for kw in range(3)]
    patches = jnp.concatenate(taps, axis=-1).reshape(M, K)
    ones_col = jnp.ones((M, 1), dtype=patches.dtype)
    zeros_tail = jnp.zeros((M, K_pad - K - 1), dtype=patches.dtype)
    patches_pad = jnp.concatenate([patches, ones_col, zeros_tail], axis=-1)

    w2d = weight.reshape(K, C_out)
    w_pad = jnp.zeros((K_pad, N_pad), dtype=weight.dtype)
    w_pad = w_pad.at[:K, :C_out].set(w2d)
    w_pad = w_pad.at[K, :C_out].set(bias.astype(weight.dtype))  # bias fold row

    # --- single fused matmul kernel ---------------------------------------
    grid = (M // tile_m,)
    out_padded = pl.pallas_call(
        _matmul_kernel,
        out_shape=jax.ShapeDtypeStruct((M, N_pad), x.dtype),
        grid_spec=pltpu.PrefetchScalarGridSpec(
            num_scalar_prefetch=0,
            grid=grid,
            in_specs=[
                pl.BlockSpec((tile_m, K_pad), lambda i: (i, 0)),
                pl.BlockSpec((K_pad, N_pad), lambda i: (0, 0)),
            ],
            out_specs=pl.BlockSpec((tile_m, N_pad), lambda i: (i, 0)),
        ),
        compiler_params=pltpu.CompilerParams(
            dimension_semantics=("parallel",)
        ),
    )(patches_pad, w_pad)

    out = out_padded[:, :C_out].reshape(B, H * W, C_out)
    return out


def _reference_forward(x, weight, bias, *, window_size):
    """Pure-JAX reference matching the PyTorch module."""
    B, L, C_in = x.shape
    H = W = window_size
    x_nhwc = x.reshape(B, H, W, C_in)
    x_pad = jnp.pad(x_nhwc, ((0, 0), (1, 1), (1, 1), (0, 0)), mode="reflect")
    y = jax.lax.conv_general_dilated(
        x_pad, weight, window_strides=(1, 1), padding="VALID",
        dimension_numbers=("NHWC", "HWIO", "NHWC"),
    )
    y = y + bias.reshape(1, 1, 1, -1)
    return y.reshape(B, H * W, -1)


if __name__ == "__main__":
    embed_dim = 32      # C_in
    num_classes = 8     # C_out
    window_size = 16    # p1 = p2
    batch = 2

    key = jax.random.PRNGKey(0)
    k_x, k_w, k_b = jax.random.split(key, 3)

    # deterministic synthetic parameters (Conv2d(embed_dim, num_classes, 3) -> HWIO)
    # (caller is responsible for the PyTorch OIHW -> HWIO conversion)
    weight = (jax.random.normal(k_w, (3, 3, embed_dim, num_classes), jnp.float32)
              * (1.0 / jnp.sqrt(9.0 * embed_dim)))
    bias = jax.random.normal(k_b, (num_classes,), jnp.float32) * 0.1

    x = jax.random.normal(k_x, (batch, window_size * window_size, embed_dim),
                          jnp.float32)

    out = cnn_head_forward(x, weight, bias, window_size=window_size)
    out = jax.block_until_ready(out)

    ref = _reference_forward(x, weight, bias, window_size=window_size)
    assert out.shape == (batch, window_size * window_size, num_classes)
    assert jnp.allclose(out, ref, atol=1e-4, rtol=1e-4), (
        float(jnp.max(jnp.abs(out - ref))))

    print("KERNEL_OK")
</pallas_src>

<mosaic_0001>
module attributes {stable_mosaic.version = 11 : i64} {
  func.func @_matmul_kernel(%arg0: i32, %arg1: memref<256x384xf32, #tpu.memory_space<vmem>>, %arg2: memref<384x128xf32, #tpu.memory_space<vmem>>, %arg3: memref<256x128xf32, #tpu.memory_space<vmem>>) attributes {dimension_semantics = [#tpu.dimension_semantics<parallel>], iteration_bounds = array<i64: 2>, scalar_prefetch = 0 : i64, scratch_operands = 0 : i64, tpu.core_type = #tpu.core_type<tc>, window_params = [{transform_indices = @transform_0, window_bounds = array<i64: 256, 384>}, {pipeline_mode = #tpu.pipeline_mode<synchronous>, transform_indices = @transform_1, window_bounds = array<i64: 384, 128>}, {transform_indices = @transform_2, window_bounds = array<i64: 256, 128>}]} {
    %c0 = arith.constant 0 : index
    %c0_0 = arith.constant 0 : index
    %0 = vector.load %arg1[%c0, %c0_0] : memref<256x384xf32, #tpu.memory_space<vmem>>, vector<256x384xf32>
    %c0_1 = arith.constant 0 : index
    %c0_2 = arith.constant 0 : index
    %1 = vector.load %arg2[%c0_1, %c0_2] : memref<384x128xf32, #tpu.memory_space<vmem>>, vector<384x128xf32>
    %cst = arith.constant dense<0.000000e+00> : vector<256x128xf32>
    %2 = tpu.matmul %0, %1, %cst {dimension_numbers = #tpu.dot_dimension_numbers<[1], [0], [0], [1], [0, 0, 1, 1], [], []>} : vector<256x384xf32>, vector<384x128xf32>, vector<256x128xf32> -> vector<256x128xf32>
    %c0_3 = arith.constant 0 : index
    %c0_4 = arith.constant 0 : index
    %3 = vector.load %arg3[%c0_3, %c0_4] : memref<256x128xf32, #tpu.memory_space<vmem>>, vector<256x128xf32>
    tpu.vector_store %arg3[%c0_3, %c0_4], %2 {strides = array<i32>} : memref<256x128xf32, #tpu.memory_space<vmem>>, vector<256x128xf32>,
    return
  }
  func.func @transform_0(%arg0: i32) -> (i32, i32) {
    %c0_i32 = arith.constant 0 : i32
    %c0_i32_0 = arith.constant 0 : i32
    return %arg0, %c0_i32 : i32, i32
  }
  func.func @transform_1(%arg0: i32) -> (i32, i32) {
    %c0_i32 = arith.constant 0 : i32
    %c0_i32_0 = arith.constant 0 : i32
    %c0_i32_1 = arith.constant 0 : i32
    return %c0_i32, %c0_i32_0 : i32, i32
  }
  func.func @transform_2(%arg0: i32) -> (i32, i32) {
    %c0_i32 = arith.constant 0 : i32
    %c0_i32_0 = arith.constant 0 : i32
    return %arg0, %c0_i32 : i32, i32
  }
}

</mosaic_0001>

<bundles_post_ra>
// kernel: tpu_custom_call.1
= control target key start
LH: loop header
LB: loop body
LE: loop exit
PB: predicated region body
PF: predicated region fallthrough
CT: control target
= control target key end

     0   :  { %7 = vsyncpa [#allocation3], 0  ;;  %s1772_s0 = inlined_call_operand.hbm [shape: f32[512,384], index: 0, kind: input, shape index: {}]   ;;  %s1773_s1 = inlined_call_operand.hbm [shape: f32[384,128], index: 1, kind: input, shape index: {}]   ;;  %s1774_s2 = inlined_call_operand.hbm [shape: f32[512,128], index: 2, kind: output, shape index: {}]  }
   0x1   :  { %9 = vsyncpa [#allocation3 + $0x1], 0 }
   0x2   :  { %10 = vsyncpa [#allocation6], 0 }
   0x3   :  { %11 = vsyncpa [#allocation4], 0 }
   0x4   :  { %13 = vsyncpa [#allocation4 + $0x1], 0  ;;  %s1381_s9 = smov 0   ;;  %s1383_s10 = smov 0  }
   0x5   :  { %s1385_s11 = smov 0   ;;  %s1387_s12 = smov 0  }
   0x6 LB: > { %s1402_s13 = sadd.s32 4294967295, %s1354_s12   ;;  %s903_s14 = sadd.s32 4294967294, %s1354_s12   ;;  %s1354_s12 = sphi %s1387_s12, %s1794_s12   ;;  %s1350_s11 = sphi %s1385_s11, %s1793_s11   ;;  %s1346_s10 = sphi %s1383_s10, %s1792_s10   ;;  %s1342_s9 = sphi %s1381_s9, %s1791_s9  }
   0x7   : > { %p39_p0 = scmp.ne.s32.totalorder %s1346_s10, %s1342_s9  ;;  %p1775_p1 = scmp.eq.s32.totalorder %s1402_s13, 0 }
   0x8   : > { %p90_p3 = scmp.eq.s32.totalorder %s903_s14, 1  ;;  %p904_p5 = scmp.ge.s32.totalorder %s1354_s12, 1 }
   0x9   : > { %p1411_p4 = por %p1775_p1, %p39_p0  ;;  %p97_p7 = scmp.lt.s32.totalorder %s1354_s12, 3 }
   0xa   : > { %p1416_p6 = por %p90_p3, %p39_p0  ;;  %s1356_s18 = smov [#allocation5]  }
   0xb   : > { %s1778_s15 = scalar_select %p1411_p4, 1, 0 }
   0xc   : > { %s1779_s16 = scalar_select %p1416_p6, 1, 0 }
   0xd   : > { %p1421_p8 = pnand %p904_p5, %p97_p7  ;;  %s109_s19 = sshll.u32 %s1356_s18, 4  ;;  %s1425_s19 = int_to_ptr.vmem [resolvable:$true] %s109_s19 }
   0xe   : > { %s1437_s21 = sadd.s32 1, %s1354_s12   ;;  %s26_s22 = sadd.s32 1, %s1350_s11 }
   0xf   : > { %s1780_s17 = scalar_select %p1421_p8, 1, 0 }
  0x10   : > { %p1170_p9 = pneg %p1421_p8  ;;  %s23_s23 = ssub.s32 %s1354_s12, %s1437_s21 }
  0x11   : > { %s1226_s26 = scalar_lea.hbm %s1773_s1, 6144 }
  0x12   : > { %p1432_p11 = pnand %p1170_p9, %p1775_p1  ;;  %p1227_p12 = scmp.ne.s32.totalorder %s1773_s1, %s1226_s26 }
  0x13   : > { %p1233_p5 = scmp.lt.u32.totalorder %s1226_s26, %s1773_s1 }
  0x14   : > { %p1228_p13 = pneg %p1432_p11 }
  0x16   : > { %p1229_p0 = pnand %p1228_p13, %p1227_p12 }
  0x18   : > { %p1230_p3 = pneg %p1229_p0 }
  0x1a   : > { %p1235_p7 = pnand %p1233_p5, %p1230_p3 }
  0x1c   : > { %1238 = shalt.err (!%p1235_p7)
}
  0x1d   : > { %s1239_s3 = scalar_lea.vmem %s1425_s19, 6144  ;;  %p1247_p2 = scmp.lt.s32.totalorder %s1425_s19, %s1425_s19 }
  0x1e   : > { %p1240_p9 = scmp.ne.s32.totalorder %s1425_s19, %s1239_s3  ;;  %p1248_p6 = scmp.lt.s32.totalorder %s1239_s3, %s1239_s3 }
  0x20   : > { %p1242_p10 = pnand %p1240_p9, %p1228_p13  ;;  %p1249_p4 = por %p1248_p6, %p1247_p2 }
  0x22   : > { %p1243_p1 = pneg %p1242_p10 }
  0x24   : > { %p1250_p8 = pnand %p1249_p4, %p1243_p1 }
  0x26   : > { %1253 = shalt.err (!%p1250_p8)
}
  0x27   : > { %s1357_s4 = smov 128   ;;  %s1358_s5 = smov 8  }
  0x28   : > { %1173 = dma.hbm_to_vmem [thread:$0]  (!%p1432_p11), %s1773_s1, 6144, %s1425_s19, [#allocation6], %s1357_s4, %s1357_s4, %s1358_s5  }
  0x29   : > { %p24_p2 = scmp.eq.s32.totalorder %s23_s23, 0  ;;  %p33_p1 = scmp.ne.s32.totalorder %s1350_s11, %s1346_s10 }
  0x2a   : > { %p34_p4 = scmp.eq.s32.totalorder %s1354_s12, 0  ;;  %p1183_p6 = scmp.lt.s32.totalorder %s1354_s12, 2 }
  0x2b   : > { %s1468_s8 = scalar_select %p24_p2, %s1350_s11, %s26_s22  }
  0x2c   : > { %p35_p8 = por %p34_p4, %p33_p1  ;;  %p1782_p10 = scmp.eq.s32.totalorder %s1402_s13, 1 }
  0x2d   : > { %s123_s18 = sand.u32 1, %s1350_s11   ;;  %s1160_s24 = smul.u32 12288, %s1354_s12 }
  0x2e   : > { %p1472_p12 = por %p1782_p10, %p33_p1  ;;  %s1159_s25 = smul.u32 768, %s123_s18 }
  0x2f   : > { %s1481_s27 = scalar_lea.hbm %s1772_s0, %s1160_s24  ;;  %p1483_p11 = pnand %p1183_p6, %p35_p8 }
  0x30   : > { %s127_s22 = scalar_lea.vmem [#allocation2], %s1159_s25  ;;  %s1489_s28 = scalar_lea.sflag [#allocation3], %s123_s18 }
  0x31   : > { %s135_s23 = sshll.u32 %s127_s22, 4  ;;  %s1254_s29 = scalar_lea.hbm %s1481_s27, 12288  ;;  %s1487_s23 = int_to_ptr.vmem [resolvable:$true] %s135_s23 }
  0x32   : > { %p1255_p13 = scmp.ne.s32.totalorder %s1481_s27, %s1254_s29  ;;  %p1256_p0 = pneg %p1483_p11 }
  0x33   : > { %s1259_s4 = scalar_lea.hbm %s1772_s0, 24576  ;;  %p1260_p7 = scmp.lt.u32.totalorder %s1481_s27, %s1772_s0 }
  0x34   : > { %p1257_p3 = pnand %p1256_p0, %p1255_p13  ;;  %p1261_p9 = scmp.lt.u32.totalorder %s1259_s4, %s1254_s29 }
  0x35   : > { %p1263_p1 = scmp.lt.u32.totalorder %s1254_s29, %s1481_s27 }
  0x36   : > { %p1258_p5 = pneg %p1257_p3  ;;  %p1262_p2 = por %p1261_p9, %p1260_p7 }
  0x38   : > { %p1264_p4 = por %p1263_p1, %p1262_p2 }
  0x3a   : > { %p1265_p6 = pnand %p1264_p4, %p1258_p5 }
  0x3c   : > { %1268 = shalt.err (!%p1265_p6)
}
  0x3d   : > { %s1269_s7 = scalar_lea.vmem %s1487_s23, 12288  ;;  %s1359_s18 = smov [#allocation2]  }
  0x3e   : > { %p1270_p8 = scmp.ne.s32.totalorder %s1487_s23, %s1269_s7  ;;  %s1274_s24 = sshll.u32 %s1359_s18, 4  ;;  %s1275_s24 = int_to_ptr.vmem [resolvable:$false] %s1274_s24 }
  0x3f   : > { %s1276_s25 = scalar_lea.vmem %s1275_s24, 24576  ;;  %p1277_p3 = scmp.lt.s32.totalorder %s1487_s23, %s1275_s24 }
  0x40   : > { %p1272_p10 = pnand %p1270_p8, %p1256_p0  ;;  %p1278_p7 = scmp.lt.s32.totalorder %s1276_s25, %s1269_s7 }
  0x42   : > { %p1273_p13 = pneg %p1272_p10  ;;  %p1279_p9 = por %p1278_p7, %p1277_p3 }
  0x44   : > { %p1280_p2 = pnand %p1279_p9, %p1273_p13 }
  0x46   : > { %1283 = shalt.err (!%p1280_p2)
}
  0x47   : > { %s1360_s20 = smov 384   ;;  %s1361_s26 = smov 24  }
  0x48   : > { %1177 = dma.hbm_to_vmem [thread:$0]  (!%p1483_p11), %s1481_s27, 12288, %s1487_s23, %s1489_s28, %s1360_s20, %s1360_s20, %s1361_s26  }
  0x49   : > { %p1785_p0 = scmp.ne.s32.totalorder %s1780_s17, 0 }
  0x4a   : > { %s1520_s22 = sand.u32 (!%p1785_p0), 1, %s1346_s10   ;;  %p1786_p5 = scmp.ne.s32.totalorder (!%p1785_p0), %s1778_s15, 0 }
  0x4b   : > { %147 = sbr.rel (%p1785_p0) target bundleno = 474 (0x1da), region = 28  ;;  %s150_s30 = scalar_lea.sflag (!%p1785_p0), [#allocation3], %s1520_s22 }
  0x4c   : > { %s1161_s29 = smul.u32 (!%p1785_p0), 768, %s1520_s22 }
  0x4e   : > { %s1524_s3 = scalar_lea.vmem (!%p1785_p0), [#allocation2], %s1161_s29 }
  0x52   : > { %1329 = dma.done.wait (%p1786_p5), %s150_s30, 12288  }
  0x53   : > { %1331 = vsyncadd (%p1786_p5), %s150_s30, 4294955008  ;;  %p1787_p11 = scmp.eq.s32.totalorder %s1402_s13, 0 }
  0x55   : > { %1333 = dma.done.wait (%p1787_p11), [#allocation6], 6144   ;;  %p1788_p1 = pmov %p1787_p11 }
  0x56   : > { %v1362_v0 = vmov 0.0|0.0   ;;  %v276_v1 = vld [vmem:[#allocation5] sm:$0xff]  ;;  %v277_v2 = vld [vmem:[#allocation5 + $0x8] sm:$0xff]  ;;  %v278_v3 = vld [vmem:[#allocation5 + $0x10] sm:$0xff]  ;;  %s912_s15 = sshll.u32 %s1520_s22, 8  ;;  %s918_s27 = sshll.u32 %s1402_s13, 12 }
  0x57   : > { %1335 = vsyncadd (%p1788_p1), [#allocation6], 4294961152  ;;  %1047 = vmatprep.subr.bf16.mxu0 %v1362_v0  ;;  %1127 = vmatprep.subr.bf16.mxu1 %v1362_v0  ;;  %v1048_v4 = vpack.c.bf16 %v277_v2, %v276_v1  ;;  %v279_v5 = vld [vmem:[#allocation5 + $0x18] sm:$0xff]  ;;  %v280_v7 = vld [vmem:[#allocation5 + $0x20] sm:$0xff]  ;;  %s1679_s17 = scalar_lea.vmem [#allocation7], %s912_s15  ;;  %s1722_s4 = scalar_lea.hbm %s1774_s2, %s918_s27 }
  0x58   : > { %v1051_v6 = vpack.c.bf16 %v279_v5, %v278_v3  ;;  %v281_v8 = vld [vmem:[#allocation5 + $0x28] sm:$0xff]  ;;  %v282_v10 = vld [vmem:[#allocation5 + $0x30] sm:$0xff]  ;;  %v283_v11 = vld [vmem:[#allocation5 + $0x38] sm:$0xff]  ;;  %s820_s19 = sshll.u32 %s1679_s17, 4  ;;  %s807_s13 = scalar_lea.sflag [#allocation4], %s1520_s22  ;;  %s1724_s19 = int_to_ptr.vmem [resolvable:$true] %s820_s19 }
  0x59   : > { %1049 = vmatpush1.bf16.msra.mxu0 %v1048_v4  ;;  %1143 = vmatpush1.bf16.msra.mxu1 %v1048_v4  ;;  %v1054_v9 = vpack.c.bf16 %v281_v8, %v280_v7  ;;  %v181_v12 = vld [vmem:[%s1524_s3 + $0x8] sm:$0xff]  ;;  %v1057_v13 = vpack.c.bf16 %v283_v11, %v282_v10  ;;  %v284_v15 = vld [vmem:[#allocation5 + $0x40] sm:$0xff]  ;;  %v286_v18 = vld [vmem:[#allocation5 + $0x50] sm:$0xff]  ;;  %s1284_s5 = scalar_lea.vmem %s1724_s19, 4096  ;;  %s1363_s6 = smov [#allocation7]  }
  0x5a   : > { %1050 = vmatprep.subr.bf16.mxu0 %v1362_v0  ;;  %1128 = vmatprep.subr.bf16.mxu1 %v1362_v0  ;;  %v253_v14 = vld [vmem:[%s1524_s3 + $0x248] sm:$0xff]  ;;  %v287_v19 = vld [vmem:[#allocation5 + $0x58] sm:$0xff]  ;;  %v288_v21 = vld [vmem:[#allocation5 + $0x60] sm:$0xff]  ;;  %p1285_p4 = scmp.ne.s32.totalorder %s1724_s19, %s1284_s5  ;;  %s1288_s7 = sshll.u32 %s1363_s6, 4  ;;  %s1289_s7 = int_to_ptr.vmem [resolvable:$false] %s1288_s7 }
  0x5b   : > { %v285_v16 = vld [vmem:[#allocation5 + $0x48] sm:$0xff]  ;;  %388 = vmatprep.mubr.f32.mxu0 %v181_v12  ;;  %508 = vmatprep.mubr.f32.mxu1 %v253_v14  ;;  %v1063_v20 = vpack.c.bf16 %v287_v19, %v286_v18  ;;  %v290_v24 = vld [vmem:[#allocation5 + $0x70] sm:$0xff]  ;;  %v291_v25 = vld [vmem:[#allocation5 + $0x78] sm:$0xff]  ;;  %s1290_s18 = scalar_lea.vmem %s1289_s7, 8192  ;;  %p1291_p10 = scmp.lt.s32.totalorder %s1724_s19, %s1289_s7 }
  0x5c   : > { %v1060_v17 = vpack.c.bf16 %v285_v16, %v284_v15  ;;  %v289_v22 = vld [vmem:[#allocation5 + $0x68] sm:$0xff]  ;;  %v1069_v26 = vpack.c.bf16 %v291_v25, %v290_v24  ;;  %v292_v27 = vld [vmem:[#allocation5 + $0x80] sm:$0xff]  ;;  %v294_v30 = vld [vmem:[#allocation5 + $0x90] sm:$0xff]  ;;  %p1286_p6 = pnand %p1285_p4, %p1472_p12  ;;  %p1292_p13 = scmp.lt.s32.totalorder %s1290_s18, %s1284_s5 }
  0x5d   : > { %1052 = vmatpush1.bf16.msra.mxu0 %v1051_v6  ;;  %1144 = vmatpush1.bf16.msra.mxu1 %v1051_v6  ;;  %v1066_v23 = vpack.c.bf16 %v289_v22, %v288_v21  ;;  %v293_v28 = vld [vmem:[#allocation5 + $0x88] sm:$0xff]  ;;  %v295_v31 = vld [vmem:[#allocation5 + $0x98] sm:$0xff]  ;;  %v296_v33 = vld [vmem:[#allocation5 + $0xa0] sm:$0xff] }
  0x5e   : > { %1053 = vmatprep.subr.bf16.mxu0 %v1362_v0  ;;  %1129 = vmatprep.subr.bf16.mxu1 %v1362_v0  ;;  %v1072_v29 = vpack.c.bf16 %v293_v28, %v292_v27  ;;  %v1075_v32 = vpack.c.bf16 %v295_v31, %v294_v30  ;;  %v297_v34 = vld [vmem:[#allocation5 + $0xa8] sm:$0xff]  ;;  %v298_v36 = vld [vmem:[#allocation5 + $0xb0] sm:$0xff]  ;;  %v299_v37 = vld [vmem:[#allocation5 + $0xb8] sm:$0xff]  ;;  %p1287_p8 = pneg %p1286_p6  ;;  %p1293_p3 = por %p1292_p13, %p1291_p10 }
  0x5f   : > { %v1078_v35 = vpack.c.bf16 %v297_v34, %v296_v33  ;;  %v1081_v38 = vpack.c.bf16 %v299_v37, %v298_v36  ;;  %v300_v39 = vld [vmem:[#allocation5 + $0xc0] sm:$0xff]  ;;  %v301_v40 = vld [vmem:[#allocation5 + $0xc8] sm:$0xff]  ;;  %v302_v42 = vld [vmem:[#allocation5 + $0xd0] sm:$0xff] }
  0x60   : > { %v1084_v41 = vpack.c.bf16 %v301_v40, %v300_v39  ;;  %v303_v43 = vld [vmem:[#allocation5 + $0xd8] sm:$0xff]  ;;  %v304_v45 = vld [vmem:[#allocation5 + $0xe0] sm:$0xff]  ;;  %v305_v46 = vld [vmem:[#allocation5 + $0xe8] sm:$0xff]  ;;  %p1294_p7 = pnand %p1293_p3, %p1287_p8 }
  0x61   : > { %1055 = vmatpush1.bf16.msra.mxu0 %v1054_v9  ;;  %1145 = vmatpush1.bf16.msra.mxu1 %v1054_v9  ;;  %v1087_v44 = vpack.c.bf16 %v303_v43, %v302_v42  ;;  %v1090_v47 = vpack.c.bf16 %v305_v46, %v304_v45  ;;  %v306_v48 = vld [vmem:[#allocation5 + $0xf0] sm:$0xff]  ;;  %v307_v49 = vld [vmem:[#allocation5 + $0xf8] sm:$0xff]  ;;  %v308_v50 = vld [vmem:[#allocation5 + $0x100] sm:$0xff] }
  0x62   : > { %1056 = vmatprep.subr.bf16.mxu0 %v1362_v0  ;;  %1130 = vmatprep.subr.bf16.mxu1 %v1362_v0  ;;  %v309_v51 = vld [vmem:[#allocation5 + $0x108] sm:$0xff]  ;;  %v1093_v52 = vpack.c.bf16 %v307_v49, %v306_v48  ;;  %v310_v54 = vld [vmem:[#allocation5 + $0x110] sm:$0xff]  ;;  %v311_v55 = vld [vmem:[#allocation5 + $0x118] sm:$0xff] }
  0x63   : > { %v1095_v53 = vpack.c.bf16 %v309_v51, %v308_v50  ;;  %v180_v56 = vld [vmem:[%s1524_s3] sm:$0xff]  ;;  %v1099_v59 = vpack.c.bf16 %v311_v55, %v310_v54  ;;  %v313_v62 = vld [vmem:[#allocation5 + $0x128] sm:$0xff]  ;;  %v183_v63 = vld [vmem:[%s1524_s3 + $0x18] sm:$0xff] }
  0x64   : > { %v252_v57 = vld [vmem:[%s1524_s3 + $0x240] sm:$0xff]  ;;  %v187_v1 = vld [vmem:[%s1524_s3 + $0x38] sm:$0xff]  ;;  %v314_v4 = vld [vmem:[#allocation5 + $0x130] sm:$0xff] }
  0x65   : > { %1058 = vmatpush1.bf16.msra.mxu0 %v1057_v13  ;;  %1146 = vmatpush1.bf16.msra.mxu1 %v1057_v13  ;;  %v184_v58 = vld [vmem:[%s1524_s3 + $0x20] sm:$0xff]  ;;  %v259_v3 = vld [vmem:[%s1524_s3 + $0x278] sm:$0xff]  ;;  %v186_v6 = vld [vmem:[%s1524_s3 + $0x30] sm:$0xff] }
  0x66   : > { %1059 = vmatprep.subr.bf16.mxu0 %v1362_v0  ;;  %1131 = vmatprep.subr.bf16.mxu1 %v1362_v0  ;;  %v256_v60 = vld [vmem:[%s1524_s3 + $0x260] sm:$0xff]  ;;  %v315_v5 = vld [vmem:[#allocation5 + $0x138] sm:$0xff]  ;;  %v258_v7 = vld [vmem:[%s1524_s3 + $0x270] sm:$0xff] }
  0x67   : > { %v312_v61 = vld [vmem:[#allocation5 + $0x120] sm:$0xff]  ;;  %v190_v8 = vld [vmem:[%s1524_s3 + $0x50] sm:$0xff]  ;;  %v1107_v9 = vpack.c.bf16 %v315_v5, %v314_v4  ;;  %v317_v12 = vld [vmem:[#allocation5 + $0x148] sm:$0xff] }
  0x68   : > { %v1103_v2 = vpack.c.bf16 %v313_v62, %v312_v61  ;;  %v262_v10 = vld [vmem:[%s1524_s3 + $0x290] sm:$0xff]  ;;  %v316_v11 = vld [vmem:[#allocation5 + $0x140] sm:$0xff]  ;;  %v189_v13 = vld [vmem:[%s1524_s3 + $0x48] sm:$0xff] }
  0x69   : > { %1061 = vmatpush1.bf16.msra.mxu0 %v1060_v17  ;;  %1147 = vmatpush1.bf16.msra.mxu1 %v1060_v17  ;;  %v261_v14 = vld [vmem:[%s1524_s3 + $0x288] sm:$0xff]  ;;  %v1111_v16 = vpack.c.bf16 %v317_v12, %v316_v11  ;;  %v318_v18 = vld [vmem:[#allocation5 + $0x150] sm:$0xff]  ;;  %v319_v19 = vld [vmem:[#allocation5 + $0x158] sm:$0xff] }
  0x6a   : > { %1062 = vmatprep.subr.bf16.mxu0 %v1362_v0  ;;  %1132 = vmatprep.subr.bf16.mxu1 %v1362_v0  ;;  %v193_v15 = vld [vmem:[%s1524_s3 + $0x68] sm:$0xff]  ;;  %v264_v21 = vld [vmem:[%s1524_s3 + $0x2a0] sm:$0xff]  ;;  %v195_v27 = vld [vmem:[%s1524_s3 + $0x78] sm:$0xff] }
  0x6b   : > { %v265_v17 = vld [vmem:[%s1524_s3 + $0x2a8] sm:$0xff]  ;;  %v196_v22 = vld [vmem:[%s1524_s3 + $0x80] sm:$0xff]  ;;  %v267_v28 = vld [vmem:[%s1524_s3 + $0x2b8] sm:$0xff] }
  0x6c   : > { %v268_v24 = vld [vmem:[%s1524_s3 + $0x2c0] sm:$0xff]  ;;  %v271_v31 = vld [vmem:[%s1524_s3 + $0x2d8] sm:$0xff]  ;;  %v198_v34 = vld [vmem:[%s1524_s3 + $0x90] sm:$0xff] }
  0x6d   : > { %1064 = vmatpush1.bf16.msra.mxu0 %v1063_v20  ;;  %1148 = vmatpush1.bf16.msra.mxu1 %v1063_v20  ;;  %v192_v20 = vld [vmem:[%s1524_s3 + $0x60] sm:$0xff]  ;;  %v323_v33 = vld [vmem:[#allocation5 + $0x178] sm:$0xff]  ;;  %v202_v36 = vld [vmem:[%s1524_s3 + $0xb0] sm:$0xff] }
  0x6e   : > { %1065 = vmatprep.subr.bf16.mxu0 %v1362_v0  ;;  %1133 = vmatprep.subr.bf16.mxu1 %v1362_v0  ;;  %v320_v25 = vld [vmem:[#allocation5 + $0x160] sm:$0xff]  ;;  %v201_v39 = vld [vmem:[%s1524_s3 + $0xa8] sm:$0xff]  ;;  %v182_v42 = vld [vmem:[%s1524_s3 + $0x10] sm:$0xff] }
  0x6f   : > { %v273_v40 = vld [vmem:[%s1524_s3 + $0x2e8] sm:$0xff]  ;;  %v204_v43 = vld [vmem:[%s1524_s3 + $0xc0] sm:$0xff]  ;;  %v191_v48 = vld [vmem:[%s1524_s3 + $0x58] sm:$0xff] }
  0x70   : > { %v208_v45 = vld [vmem:[%s1524_s3 + $0xe0] sm:$0xff]  ;;  %v211_v49 = vld [vmem:[%s1524_s3 + $0xf8] sm:$0xff]  ;;  %v194_v50 = vld [vmem:[%s1524_s3 + $0x70] sm:$0xff] }
  0x71   : > { %1067 = vmatpush1.bf16.msra.mxu0 %v1066_v23  ;;  %1149 = vmatpush1.bf16.msra.mxu1 %v1066_v23  ;;  %v1115_v23 = vpack.c.bf16 %v319_v19, %v318_v18  ;;  %v188_v46 = vld [vmem:[%s1524_s3 + $0x40] sm:$0xff]  ;;  %v210_v51 = vld [vmem:[%s1524_s3 + $0xf0] sm:$0xff]  ;;  %v213_v55 = vld [vmem:[%s1524_s3 + $0x108] sm:$0xff] }
  0x72   : > { %1068 = vmatprep.subr.bf16.mxu0 %v1362_v0  ;;  %1134 = vmatprep.subr.bf16.mxu1 %v1362_v0  ;;  %v200_v54 = vld [vmem:[%s1524_s3 + $0xa0] sm:$0xff]  ;;  %v221_v4 = vld [vmem:[%s1524_s3 + $0x148] sm:$0xff]  ;;  %v226_v5 = vld [vmem:[%s1524_s3 + $0x170] sm:$0xff] }
  0x73   : > { %v220_v61 = vld [vmem:[%s1524_s3 + $0x140] sm:$0xff]  ;;  %v233_v12 = vld [vmem:[%s1524_s3 + $0x1a8] sm:$0xff]  ;;  %v242_v18 = vld [vmem:[%s1524_s3 + $0x1f0] sm:$0xff] }
  0x74   : > { %v212_v62 = vld [vmem:[%s1524_s3 + $0x100] sm:$0xff]  ;;  %v234_v19 = vld [vmem:[%s1524_s3 + $0x1b0] sm:$0xff] }
  0x75   : > { %1070 = vmatpush1.bf16.msra.mxu0 %v1069_v26  ;;  %1150 = vmatpush1.bf16.msra.mxu1 %v1069_v26  ;;  %v321_v26 = vld [vmem:[#allocation5 + $0x168] sm:$0xff]  ;;  %v228_v11 = vld [vmem:[%s1524_s3 + $0x180] sm:$0xff] }
  0x76   : > { %1071 = vmatprep.subr.bf16.mxu0 %v1362_v0  ;;  %1135 = vmatprep.subr.bf16.mxu1 %v1362_v0  ;;  %v1119_v30 = vpack.c.bf16 %v321_v26, %v320_v25  ;;  %v241_v25 = vld [vmem:[%s1524_s3 + $0x1e8] sm:$0xff]  ;;  %v254_v26 = vld [vmem:[%s1524_s3 + $0x250] sm:$0xff] }
  0x79   : > { %1073 = vmatpush1.bf16.msra.mxu0 %v1072_v29  ;;  %1151 = vmatpush1.bf16.msra.mxu1 %v1072_v29  ;;  %v199_v29 = vld [vmem:[%s1524_s3 + $0x98] sm:$0xff] }
  0x7a   : > { %1074 = vmatprep.subr.bf16.mxu0 %v1362_v0  ;;  %1136 = vmatprep.subr.bf16.mxu1 %v1362_v0 }
  0x7d   : > { %1076 = vmatpush1.bf16.msra.mxu0 %v1075_v32  ;;  %1152 = vmatpush1.bf16.msra.mxu1 %v1075_v32  ;;  %v322_v32 = vld [vmem:[#allocation5 + $0x170] sm:$0xff] }
  0x7e   : > { %1077 = vmatprep.subr.bf16.mxu0 %v1362_v0  ;;  %1137 = vmatprep.subr.bf16.mxu1 %v1362_v0  ;;  %v1123_v37 = vpack.c.bf16 %v323_v33, %v322_v32  ;;  %v263_v32 = vld [vmem:[%s1524_s3 + $0x298] sm:$0xff] }
  0x7f   : > { %v247_v33 = vld [vmem:[%s1524_s3 + $0x218] sm:$0xff] }
  0x81   : > { %1079 = vmatpush1.bf16.msra.mxu0 %v1078_v35  ;;  %1153 = vmatpush1.bf16.msra.mxu1 %v1078_v35  ;;  %v270_v35 = vld [vmem:[%s1524_s3 + $0x2d0] sm:$0xff] }
  0x82   : > { %1080 = vmatprep.subr.bf16.mxu0 %v1362_v0  ;;  %1138 = vmatprep.subr.bf16.mxu1 %v1362_v0 }
  0x85   : > { %1082 = vmatpush1.bf16.msra.mxu0 %v1081_v38  ;;  %1154 = vmatpush1.bf16.msra.mxu1 %v1081_v38  ;;  %v274_v38 = vld [vmem:[%s1524_s3 + $0x2f0] sm:$0xff] }
  0x86   : > { %1083 = vmatprep.subr.bf16.mxu0 %v1362_v0  ;;  %1139 = vmatprep.subr.bf16.mxu1 %v1362_v0 }
  0x89   : > { %1085 = vmatpush1.bf16.msra.mxu0 %v1084_v41  ;;  %1155 = vmatpush1.bf16.msra.mxu1 %v1084_v41  ;;  %v205_v41 = vld [vmem:[%s1524_s3 + $0xc8] sm:$0xff] }
  0x8a   : > { %1086 = vmatprep.subr.bf16.mxu0 %v1362_v0  ;;  %1140 = vmatprep.subr.bf16.mxu1 %v1362_v0 }
  0x8d   : > { %1088 = vmatpush1.bf16.msra.mxu0 %v1087_v44  ;;  %1156 = vmatpush1.bf16.msra.mxu1 %v1087_v44  ;;  %v185_v44 = vld [vmem:[%s1524_s3 + $0x28] sm:$0xff] }
  0x8e   : > { %1089 = vmatprep.subr.bf16.mxu0 %v1362_v0  ;;  %1141 = vmatprep.subr.bf16.mxu1 %v1362_v0 }
  0x91   : > { %1091 = vmatpush1.bf16.msra.mxu0 %v1090_v47  ;;  %1157 = vmatpush1.bf16.msra.mxu1 %v1090_v47  ;;  %v207_v47 = vld [vmem:[%s1524_s3 + $0xd8] sm:$0xff] }
  0x92   : > { %1092 = vmatprep.subr.bf16.mxu0 %v1362_v0  ;;  %1142 = vmatprep.subr.bf16.mxu1 %v1362_v0  ;;  %v255_v0 = vld [vmem:[%s1524_s3 + $0x258] sm:$0xff] }
  0x95   : > { %1094 = vmatpush1.bf16.msra.mxu0 %v1093_v52  ;;  %1158 = vmatpush1.bf16.msra.mxu1 %v1093_v52  ;;  %v197_v52 = vld [vmem:[%s1524_s3 + $0x88] sm:$0xff] }
  0x96   : > { %1096 = vmatprep.subr.bf16.mxu1 %v1095_v53 }
  0x98   : > { %389 = vmatmul.mubr.f32.vlgmr.msra.gmra.mrb[0].mxu0 %v180_v56  ;;  %509 = vmatmul.mubr.f32.vlgmr.msra.gmra.mrb[0].mxu1 %v252_v57  ;;  %v203_v56 = vld [vmem:[%s1524_s3 + $0xb8] sm:$0xff]  ;;  %v217_v57 = vld [vmem:[%s1524_s3 + $0x128] sm:$0xff] }
  0x99   : > { %1098 = vmatpush3.bf16.msra.mxu1 %v1095_v53  ;;  %393 = vmatprep.mubr.f32.mxu0 %v184_v58  ;;  %v214_v53 = vld [vmem:[%s1524_s3 + $0x110] sm:$0xff] }
  0x9a   : > { %513 = vmatprep.mubr.f32.mxu1 %v256_v60  ;;  %1100 = vmatprep.subr.bf16.mxu1 %v1099_v59  ;;  %v206_v58 = vld [vmem:[%s1524_s3 + $0xd0] sm:$0xff]  ;;  %v209_v60 = vld [vmem:[%s1524_s3 + $0xe8] sm:$0xff] }
  0x9c   : > { %394 = vmatmul.mubr.f32.gmra.mrb[2].mxu0 %v183_v63  ;;  %514 = vmatmul.mubr.f32.gmra.mrb[2].mxu1 %v255_v0  ;;  %v219_v63 = vld [vmem:[%s1524_s3 + $0x138] sm:$0xff] }
  0x9d   : > { %1102 = vmatpush3.bf16.msra.mxu1 %v1099_v59  ;;  %398 = vmatprep.mubr.f32.mxu0 %v187_v1  ;;  %v216_v59 = vld [vmem:[%s1524_s3 + $0x120] sm:$0xff]  ;;  %v215_v0 = vld [vmem:[%s1524_s3 + $0x118] sm:$0xff] }
  0x9e   : > { %518 = vmatprep.mubr.f32.mxu1 %v259_v3  ;;  %1104 = vmatprep.subr.bf16.mxu1 %v1103_v2  ;;  %v223_v1 = vld [vmem:[%s1524_s3 + $0x158] sm:$0xff]  ;;  %v222_v3 = vld [vmem:[%s1524_s3 + $0x150] sm:$0xff] }
  0xa0   : > { %399 = vmatmul.mubr.f32.gmra.mrb[4].mxu0 %v186_v6  ;;  %519 = vmatmul.mubr.f32.gmra.mrb[4].mxu1 %v258_v7  ;;  %v224_v6 = vld [vmem:[%s1524_s3 + $0x160] sm:$0xff]  ;;  %v225_v7 = vld [vmem:[%s1524_s3 + $0x168] sm:$0xff] }
  0xa1   : > { %1106 = vmatpush3.bf16.msra.mxu1 %v1103_v2  ;;  %403 = vmatprep.mubr.f32.mxu0 %v190_v8  ;;  %v218_v2 = vld [vmem:[%s1524_s3 + $0x130] sm:$0xff]  ;;  %v227_v8 = vld [vmem:[%s1524_s3 + $0x178] sm:$0xff] }
  0xa2   : > { %523 = vmatprep.mubr.f32.mxu1 %v262_v10  ;;  %1108 = vmatprep.subr.bf16.mxu1 %v1107_v9  ;;  %v230_v10 = vld [vmem:[%s1524_s3 + $0x190] sm:$0xff] }
  0xa4   : > { %404 = vmatmul.mubr.f32.gmra.mrb[6].mxu0 %v189_v13  ;;  %524 = vmatmul.mubr.f32.gmra.mrb[6].mxu1 %v261_v14  ;;  %v232_v13 = vld [vmem:[%s1524_s3 + $0x1a0] sm:$0xff] }
  0xa5   : > { %1110 = vmatpush3.bf16.msra.mxu1 %v1107_v9  ;;  %408 = vmatprep.mubr.f32.mxu0 %v193_v15  ;;  %v229_v9 = vld [vmem:[%s1524_s3 + $0x188] sm:$0xff]  ;;  %v236_v14 = vld [vmem:[%s1524_s3 + $0x1c0] sm:$0xff]  ;;  %v231_v15 = vld [vmem:[%s1524_s3 + $0x198] sm:$0xff] }
  0xa6   : > { %528 = vmatprep.mubr.f32.mxu1 %v265_v17  ;;  %1112 = vmatprep.subr.bf16.mxu1 %v1111_v16  ;;  %v235_v17 = vld [vmem:[%s1524_s3 + $0x1b8] sm:$0xff] }
  0xa8   : > { %409 = vmatmul.mubr.f32.gmra.mrb[8].mxu0 %v192_v20  ;;  %529 = vmatmul.mubr.f32.gmra.mrb[8].mxu1 %v264_v21  ;;  %v245_v20 = vld [vmem:[%s1524_s3 + $0x208] sm:$0xff]  ;;  %v238_v21 = vld [vmem:[%s1524_s3 + $0x1d0] sm:$0xff] }
  0xa9   : > { %1114 = vmatpush3.bf16.msra.mxu1 %v1111_v16  ;;  %413 = vmatprep.mubr.f32.mxu0 %v196_v22  ;;  %v239_v16 = vld [vmem:[%s1524_s3 + $0x1d8] sm:$0xff]  ;;  %v248_v22 = vld [vmem:[%s1524_s3 + $0x220] sm:$0xff] }
  0xaa   : > { %533 = vmatprep.mubr.f32.mxu1 %v268_v24  ;;  %1116 = vmatprep.subr.bf16.mxu1 %v1115_v23  ;;  %v251_v24 = vld [vmem:[%s1524_s3 + $0x238] sm:$0xff] }
  0xac   : > { %414 = vmatmul.mubr.f32.gmra.mrb[10].mxu0 %v195_v27  ;;  %534 = vmatmul.mubr.f32.gmra.mrb[10].mxu1 %v267_v28  ;;  %v240_v27 = vld [vmem:[%s1524_s3 + $0x1e0] sm:$0xff]  ;;  %v257_v28 = vld [vmem:[%s1524_s3 + $0x268] sm:$0xff] }
  0xad   : > { %1118 = vmatpush3.bf16.msra.mxu1 %v1115_v23  ;;  %418 = vmatprep.mubr.f32.mxu0 %v199_v29  ;;  %v237_v23 = vld [vmem:[%s1524_s3 + $0x1c8] sm:$0xff]  ;;  %v244_v29 = vld [vmem:[%s1524_s3 + $0x200] sm:$0xff] }
  0xae   : > { %538 = vmatprep.mubr.f32.mxu1 %v271_v31  ;;  %1120 = vmatprep.subr.bf16.mxu1 %v1119_v30  ;;  %v243_v31 = vld [vmem:[%s1524_s3 + $0x1f8] sm:$0xff] }
  0xb0   : > { %419 = vmatmul.mubr.f32.gmra.mrb[12].mxu0 %v198_v34  ;;  %539 = vmatmul.mubr.f32.gmra.mrb[12].mxu1 %v270_v35  ;;  %v266_v34 = vld [vmem:[%s1524_s3 + $0x2b0] sm:$0xff] }
  0xb1   : > { %1122 = vmatpush3.bf16.msra.mxu1 %v1119_v30  ;;  %423 = vmatprep.mubr.f32.mxu0 %v202_v36  ;;  %v260_v30 = vld [vmem:[%s1524_s3 + $0x280] sm:$0xff]  ;;  %v246_v35 = vld [vmem:[%s1524_s3 + $0x210] sm:$0xff]  ;;  %v269_v36 = vld [vmem:[%s1524_s3 + $0x2c8] sm:$0xff] }
  0xb2   : > { %543 = vmatprep.mubr.f32.mxu1 %v274_v38  ;;  %1124 = vmatprep.subr.bf16.mxu1 %v1123_v37  ;;  %v272_v38 = vld [vmem:[%s1524_s3 + $0x2e0] sm:$0xff] }
  0xb4   : > { %424 = vmatmul.mubr.f32.gmra.mrb[14].mxu0 %v201_v39  ;;  %544 = vmatmul.mubr.f32.gmra.mrb[14].mxu1 %v273_v40  ;;  %v249_v39 = vld [vmem:[%s1524_s3 + $0x228] sm:$0xff]  ;;  %v275_v40 = vld [vmem:[%s1524_s3 + $0x2f8] sm:$0xff] }
  0xb5   : > { %1126 = vmatpush3.bf16.msra.mxu1 %v1123_v37  ;;  %428 = vmatprep.mubr.f32.mxu0 %v205_v41  ;;  %v250_v37 = vld [vmem:[%s1524_s3 + $0x230] sm:$0xff] }
  0xb6   : > { %999 = vmatprep.mubr.f32.mxu1 %v182_v42 }
  0xb8   : > { %429 = vmatmul.mubr.f32.gmra.mrb[16].mxu0 %v204_v43  ;;  %1000 = vmatmul.mubr.f32.vlgmr.msra.gmra.mrb[16].mxu1 %v185_v44 }
  0xb9   : > { %433 = vmatprep.mubr.f32.mxu0 %v208_v45  ;;  %1002 = vmatprep.mubr.f32.mxu1 %v188_v46 }
  0xbc   : > { %434 = vmatmul.mubr.f32.gmra.mrb[18].mxu0 %v207_v47  ;;  %1003 = vmatmul.mubr.f32.gmra.mrb[18].mxu1 %v191_v48 }
  0xbd   : > { %438 = vmatprep.mubr.f32.mxu0 %v211_v49  ;;  %1005 = vmatprep.mubr.f32.mxu1 %v194_v50 }
  0xc0   : > { %439 = vmatmul.mubr.f32.gmra.mrb[20].mxu0 %v210_v51  ;;  %1006 = vmatmul.mubr.f32.gmra.mrb[20].mxu1 %v197_v52 }
  0xc1   : > { %443 = vmatprep.mubr.f32.mxu0 %v214_v53  ;;  %1008 = vmatprep.mubr.f32.mxu1 %v200_v54 }
  0xc4   : > { %444 = vmatmul.mubr.f32.gmra.mrb[22].mxu0 %v213_v55  ;;  %1009 = vmatmul.mubr.f32.gmra.mrb[22].mxu1 %v203_v56 }
  0xc5   : > { %448 = vmatprep.mubr.f32.mxu0 %v217_v57  ;;  %1011 = vmatprep.mubr.f32.mxu1 %v206_v58 }
  0xc8   : > { %449 = vmatmul.mubr.f32.gmra.mrb[24].mxu0 %v216_v59  ;;  %1012 = vmatmul.mubr.f32.gmra.mrb[24].mxu1 %v209_v60 }
  0xc9   : > { %453 = vmatprep.mubr.f32.mxu0 %v220_v61  ;;  %1014 = vmatprep.mubr.f32.mxu1 %v212_v62 }
  0xcc   : > { %454 = vmatmul.mubr.f32.gmra.mrb[26].mxu0 %v219_v63  ;;  %1015 = vmatmul.mubr.f32.gmra.mrb[26].mxu1 %v215_v0 }
  0xcd   : > { %458 = vmatprep.mubr.f32.mxu0 %v223_v1  ;;  %1017 = vmatprep.mubr.f32.mxu1 %v218_v2 }
  0xd0   : > { %459 = vmatmul.mubr.f32.gmra.mrb[28].mxu0 %v222_v3  ;;  %1018 = vmatmul.mubr.f32.gmra.mrb[28].mxu1 %v221_v4 }
  0xd1   : > { %463 = vmatprep.mubr.f32.mxu0 %v226_v5  ;;  %1020 = vmatprep.mubr.f32.mxu1 %v224_v6 }
  0xd4   : > { %464 = vmatmul.mubr.f32.gmra.mrb[30].mxu0 %v225_v7  ;;  %1021 = vmatmul.mubr.f32.gmra.mrb[30].mxu1 %v227_v8 }
  0xd5   : > { %468 = vmatprep.mubr.f32.mxu0 %v229_v9  ;;  %1023 = vmatprep.mubr.f32.mxu1 %v230_v10 }
  0xd8   : > { %469 = vmatmul.mubr.f32.gmra.mrb[32].mxu0 %v228_v11  ;;  %1024 = vmatmul.mubr.f32.gmra.mrb[32].mxu1 %v233_v12 }
  0xd9   : > { %473 = vmatprep.mubr.f32.mxu0 %v232_v13  ;;  %1026 = vmatprep.mubr.f32.mxu1 %v236_v14 }
  0xdc   : > { %474 = vmatmul.mubr.f32.gmra.mrb[34].mxu0 %v231_v15  ;;  %1027 = vmatmul.mubr.f32.gmra.mrb[34].mxu1 %v239_v16 }
  0xdd   : > { %478 = vmatprep.mubr.f32.mxu0 %v235_v17  ;;  %1029 = vmatprep.mubr.f32.mxu1 %v242_v18 }
  0xe0   : > { %479 = vmatmul.mubr.f32.gmra.mrb[36].mxu0 %v234_v19  ;;  %1030 = vmatmul.mubr.f32.gmra.mrb[36].mxu1 %v245_v20 }
  0xe1   : > { %483 = vmatprep.mubr.f32.mxu0 %v238_v21  ;;  %1032 = vmatprep.mubr.f32.mxu1 %v248_v22 }
  0xe4   : > { %484 = vmatmul.mubr.f32.gmra.mrb[38].mxu0 %v237_v23  ;;  %1033 = vmatmul.mubr.f32.gmra.mrb[38].mxu1 %v251_v24 }
  0xe5   : > { %488 = vmatprep.mubr.f32.mxu0 %v241_v25  ;;  %1035 = vmatprep.mubr.f32.mxu1 %v254_v26 }
  0xe8   : > { %489 = vmatmul.mubr.f32.gmra.mrb[40].mxu0 %v240_v27  ;;  %1036 = vmatmul.mubr.f32.gmra.mrb[40].mxu1 %v257_v28 }
  0xe9   : > { %493 = vmatprep.mubr.f32.mxu0 %v244_v29  ;;  %1038 = vmatprep.mubr.f32.mxu1 %v260_v30 }
  0xec   : > { %494 = vmatmul.mubr.f32.gmra.mrb[42].mxu0 %v243_v31  ;;  %1039 = vmatmul.mubr.f32.gmra.mrb[42].mxu1 %v263_v32 }
  0xed   : > { %498 = vmatprep.mubr.f32.mxu0 %v247_v33  ;;  %1041 = vmatprep.mubr.f32.mxu1 %v266_v34 }
  0xf0   : > { %499 = vmatmul.mubr.f32.gmra.mrb[44].mxu0 %v246_v35  ;;  %1042 = vmatmul.mubr.f32.gmra.mrb[44].mxu1 %v269_v36 }
  0xf1   : > { %503 = vmatprep.mubr.f32.mxu0 %v250_v37  ;;  %1044 = vmatprep.mubr.f32.mxu1 %v272_v38 }
  0xf4   : > { %504 = vmatmul.mubr.f32.gmra.mrb[46].mxu0 %v249_v39  ;;  %1045 = vmatmul.mubr.f32.gmra.mrb[46].mxu1 %v275_v40 }
 0x16b   : > { %v1662_v41 = vpop.f32.mrb[0].mxu1  ;;  %v390_v42 = vpop.f32.mrb[0].mxu0 }
 0x16c   : > { %v512_v43 = vpop.f32.mrb[1].mxu1  ;;  %v392_v44 = vpop.f32.mrb[1].mxu0 }
 0x16f   : > { %v1664_v45 = vpop.f32.mrb[2].mxu1  ;;  %v395_v46 = vpop.f32.mrb[2].mxu0 }
 0x170   : > { %v517_v47 = vpop.f32.mrb[3].mxu1  ;;  %v397_v48 = vpop.f32.mrb[3].mxu0 }
 0x173   : > { %v1666_v49 = vpop.f32.mrb[4].mxu1  ;;  %v400_v50 = vpop.f32.mrb[4].mxu0 }
 0x174   : > { %v522_v51 = vpop.f32.mrb[5].mxu1  ;;  %v402_v52 = vpop.f32.mrb[5].mxu0 }
 0x177   : > { %v1668_v53 = vpop.f32.mrb[6].mxu1  ;;  %v405_v54 = vpop.f32.mrb[6].mxu0 }
 0x178   : > { %v527_v55 = vpop.f32.mrb[7].mxu1  ;;  %v407_v56 = vpop.f32.mrb[7].mxu0 }
 0x17b   : > { %v1670_v57 = vpop.f32.mrb[8].mxu1  ;;  %v410_v58 = vpop.f32.mrb[8].mxu0 }
 0x17c   : > { %v532_v59 = vpop.f32.mrb[9].mxu1  ;;  %v412_v60 = vpop.f32.mrb[9].mxu0 }
 0x17f   : > { %v1672_v61 = vpop.f32.mrb[10].mxu1  ;;  %v415_v62 = vpop.f32.mrb[10].mxu0 }
 0x180   : > { %v537_v63 = vpop.f32.mrb[11].mxu1  ;;  %v417_v0 = vpop.f32.mrb[11].mxu0 }
 0x183   : > { %v1674_v1 = vpop.f32.mrb[12].mxu1  ;;  %v420_v2 = vpop.f32.mrb[12].mxu0 }
 0x184   : > { %v542_v3 = vpop.f32.mrb[13].mxu1  ;;  %v422_v4 = vpop.f32.mrb[13].mxu0 }
 0x187   : > { %v1676_v5 = vpop.f32.mrb[14].mxu1  ;;  %v425_v6 = vpop.f32.mrb[14].mxu0 }
 0x188   : > { %v547_v7 = vpop.f32.mrb[15].mxu1  ;;  %v427_v8 = vpop.f32.mrb[15].mxu0 }
 0x18b   : > { %v1001_v9 = vpop.f32.mrb[16].mxu1  ;;  %v430_v10 = vpop.f32.mrb[16].mxu0 }
 0x18c   : > { %v621_v11 = vadd.f32 %v1001_v9, %v395_v46  ;;  %v615_v12 = vpop.f32.mrb[17].mxu1  ;;  %v432_v13 = vpop.f32.mrb[17].mxu0 }
 0x18d   : > { %v616_v14 = vadd.f32 %v615_v12, %v390_v42 }
 0x18e   : > { %775 = vst [vmem:[%s1679_s17 + $0x8] sm:$0xff] %v621_v11 }
 0x18f   : > { %774 = vst [vmem:[%s1679_s17] sm:$0xff] %v616_v14  ;;  %v1004_v15 = vpop.f32.mrb[18].mxu1  ;;  %v435_v16 = vpop.f32.mrb[18].mxu0 }
 0x190   : > { %v631_v17 = vadd.f32 %v1004_v15, %v405_v54  ;;  %v625_v18 = vpop.f32.mrb[19].mxu1  ;;  %v437_v19 = vpop.f32.mrb[19].mxu0 }
 0x191   : > { %v626_v20 = vadd.f32 %v625_v18, %v400_v50 }
 0x192   : > { %777 = vst [vmem:[%s1679_s17 + $0x18] sm:$0xff] %v631_v17 }
 0x193   : > { %776 = vst [vmem:[%s1679_s17 + $0x10] sm:$0xff] %v626_v20  ;;  %v1007_v21 = vpop.f32.mrb[20].mxu1  ;;  %v440_v22 = vpop.f32.mrb[20].mxu0 }
 0x194   : > { %v641_v23 = vadd.f32 %v1007_v21, %v415_v62  ;;  %v635_v24 = vpop.f32.mrb[21].mxu1  ;;  %v442_v25 = vpop.f32.mrb[21].mxu0 }
 0x195   : > { %v636_v26 = vadd.f32 %v635_v24, %v410_v58 }
 0x196   : > { %779 = vst [vmem:[%s1679_s17 + $0x28] sm:$0xff] %v641_v23 }
 0x197   : > { %778 = vst [vmem:[%s1679_s17 + $0x20] sm:$0xff] %v636_v26  ;;  %v1010_v27 = vpop.f32.mrb[22].mxu1  ;;  %v445_v28 = vpop.f32.mrb[22].mxu0 }
 0x198   : > { %v651_v29 = vadd.f32 %v1010_v27, %v425_v6  ;;  %v645_v30 = vpop.f32.mrb[23].mxu1  ;;  %v447_v31 = vpop.f32.mrb[23].mxu0 }
 0x199   : > { %v646_v32 = vadd.f32 %v645_v30, %v420_v2 }
 0x19a   : > { %781 = vst [vmem:[%s1679_s17 + $0x38] sm:$0xff] %v651_v29 }
 0x19b   : > { %780 = vst [vmem:[%s1679_s17 + $0x30] sm:$0xff] %v646_v32  ;;  %v1013_v33 = vpop.f32.mrb[24].mxu1  ;;  %v450_v34 = vpop.f32.mrb[24].mxu0 }
 0x19c   : > { %v661_v35 = vadd.f32 %v1013_v33, %v435_v16  ;;  %v655_v36 = vpop.f32.mrb[25].mxu1  ;;  %v452_v37 = vpop.f32.mrb[25].mxu0 }
 0x19d   : > { %v656_v38 = vadd.f32 %v655_v36, %v430_v10 }
 0x19e   : > { %783 = vst [vmem:[%s1679_s17 + $0x48] sm:$0xff] %v661_v35 }
 0x19f   : > { %782 = vst [vmem:[%s1679_s17 + $0x40] sm:$0xff] %v656_v38  ;;  %v1016_v39 = vpop.f32.mrb[26].mxu1  ;;  %v455_v40 = vpop.f32.mrb[26].mxu0 }
 0x1a0   : > { %v671_v42 = vadd.f32 %v1016_v39, %v445_v28  ;;  %v665_v43 = vpop.f32.mrb[27].mxu1  ;;  %v457_v44 = vpop.f32.mrb[27].mxu0 }
 0x1a1   : > { %v666_v46 = vadd.f32 %v665_v43, %v440_v22 }
 0x1a2   : > { %785 = vst [vmem:[%s1679_s17 + $0x58] sm:$0xff] %v671_v42 }
 0x1a3   : > { %784 = vst [vmem:[%s1679_s17 + $0x50] sm:$0xff] %v666_v46  ;;  %v1019_v47 = vpop.f32.mrb[28].mxu1  ;;  %v460_v48 = vpop.f32.mrb[28].mxu0 }
 0x1a4   : > { %v681_v50 = vadd.f32 %v1019_v47, %v455_v40  ;;  %v675_v51 = vpop.f32.mrb[29].mxu1  ;;  %v462_v52 = vpop.f32.mrb[29].mxu0 }
 0x1a5   : > { %v676_v54 = vadd.f32 %v675_v51, %v450_v34 }
 0x1a6   : > { %787 = vst [vmem:[%s1679_s17 + $0x68] sm:$0xff] %v681_v50 }
 0x1a7   : > { %786 = vst [vmem:[%s1679_s17 + $0x60] sm:$0xff] %v676_v54  ;;  %v1022_v55 = vpop.f32.mrb[30].mxu1  ;;  %v465_v56 = vpop.f32.mrb[30].mxu0 }
 0x1a8   : > { %v691_v58 = vadd.f32 %v1022_v55, %v465_v56  ;;  %v685_v59 = vpop.f32.mrb[31].mxu1  ;;  %v467_v60 = vpop.f32.mrb[31].mxu0 }
 0x1a9   : > { %v686_v62 = vadd.f32 %v685_v59, %v460_v48 }
 0x1aa   : > { %789 = vst [vmem:[%s1679_s17 + $0x78] sm:$0xff] %v691_v58 }
 0x1ab   : > { %788 = vst [vmem:[%s1679_s17 + $0x70] sm:$0xff] %v686_v62  ;;  %v1025_v63 = vpop.f32.mrb[32].mxu1  ;;  %v470_v0 = vpop.f32.mrb[32].mxu0 }
 0x1ac   : > { %v695_v2 = vpop.f32.mrb[33].mxu1  ;;  %v472_v3 = vpop.f32.mrb[33].mxu0 }
 0x1ad   : > { %v696_v4 = vadd.f32 %v695_v2, %v470_v0 }
 0x1af   : > { %790 = vst [vmem:[%s1679_s17 + $0x80] sm:$0xff] %v696_v4  ;;  %v475_v6 = vpop.f32.mrb[34].mxu0  ;;  %v1028_v7 = vpop.f32.mrb[34].mxu1 }
 0x1b0   : > { %v701_v8 = vadd.f32 %v1025_v63, %v475_v6  ;;  %v705_v9 = vpop.f32.mrb[35].mxu1  ;;  %v477_v10 = vpop.f32.mrb[35].mxu0 }
 0x1b2   : > { %791 = vst [vmem:[%s1679_s17 + $0x88] sm:$0xff] %v701_v8 }
 0x1b3   : > { %v480_v11 = vpop.f32.mrb[36].mxu0  ;;  %v1031_v12 = vpop.f32.mrb[36].mxu1 }
 0x1b4   : > { %v706_v13 = vadd.f32 %v705_v9, %v480_v11  ;;  %v715_v14 = vpop.f32.mrb[37].mxu1  ;;  %v482_v15 = vpop.f32.mrb[37].mxu0 }
 0x1b6   : > { %792 = vst [vmem:[%s1679_s17 + $0x90] sm:$0xff] %v706_v13 }
 0x1b7   : > { %v485_v16 = vpop.f32.mrb[38].mxu0  ;;  %v1034_v17 = vpop.f32.mrb[38].mxu1 }
 0x1b8   : > { %v711_v18 = vadd.f32 %v1028_v7, %v485_v16  ;;  %v725_v19 = vpop.f32.mrb[39].mxu1  ;;  %v487_v20 = vpop.f32.mrb[39].mxu0 }
 0x1ba   : > { %793 = vst [vmem:[%s1679_s17 + $0x98] sm:$0xff] %v711_v18 }
 0x1bb   : > { %v490_v21 = vpop.f32.mrb[40].mxu0  ;;  %v1037_v22 = vpop.f32.mrb[40].mxu1 }
 0x1bc   : > { %v716_v23 = vadd.f32 %v715_v14, %v490_v21  ;;  %v741_v24 = vadd.f32 %v1037_v22, %v1664_v45  ;;  %v735_v25 = vpop.f32.mrb[41].mxu1  ;;  %v492_v26 = vpop.f32.mrb[41].mxu0 }
 0x1bd   : > { %v736_v27 = vadd.f32 %v735_v25, %v1662_v41 }
 0x1be   : > { %794 = vst [vmem:[%s1679_s17 + $0xa0] sm:$0xff] %v716_v23  ;;  %799 = vst [vmem:[%s1679_s17 + $0xc8] sm:$0xff] %v741_v24 }
 0x1bf   : > { %798 = vst [vmem:[%s1679_s17 + $0xc0] sm:$0xff] %v736_v27  ;;  %v495_v28 = vpop.f32.mrb[42].mxu0  ;;  %v1040_v29 = vpop.f32.mrb[42].mxu1 }
 0x1c0   : > { %v721_v30 = vadd.f32 %v1031_v12, %v495_v28  ;;  %v751_v31 = vadd.f32 %v1040_v29, %v1668_v53  ;;  %v745_v32 = vpop.f32.mrb[43].mxu1  ;;  %v497_v33 = vpop.f32.mrb[43].mxu0 }
 0x1c1   : > { %v746_v45 = vadd.f32 %v745_v32, %v1666_v49 }
 0x1c2   : > { %795 = vst [vmem:[%s1679_s17 + $0xa8] sm:$0xff] %v721_v30  ;;  %801 = vst [vmem:[%s1679_s17 + $0xd8] sm:$0xff] %v751_v31 }
 0x1c3   : > { %800 = vst [vmem:[%s1679_s17 + $0xd0] sm:$0xff] %v746_v45  ;;  %v500_v41 = vpop.f32.mrb[44].mxu0  ;;  %v1043_v34 = vpop.f32.mrb[44].mxu1 }
 0x1c4   : > { %v726_v35 = vadd.f32 %v725_v19, %v500_v41  ;;  %v761_v36 = vadd.f32 %v1043_v34, %v1672_v61  ;;  %v755_v37 = vpop.f32.mrb[45].mxu1  ;;  %v502_v38 = vpop.f32.mrb[45].mxu0 }
 0x1c5   : > { %v756_v53 = vadd.f32 %v755_v37, %v1670_v57 }
 0x1c6   : > { %796 = vst [vmem:[%s1679_s17 + $0xb0] sm:$0xff] %v726_v35  ;;  %803 = vst [vmem:[%s1679_s17 + $0xe8] sm:$0xff] %v761_v36 }
 0x1c7   : > { %802 = vst [vmem:[%s1679_s17 + $0xe0] sm:$0xff] %v756_v53  ;;  %v505_v49 = vpop.f32.mrb[46].mxu0  ;;  %v1046_v39 = vpop.f32.mrb[46].mxu1 }
 0x1c8   : > { %v731_v40 = vadd.f32 %v1034_v17, %v505_v49  ;;  %v771_v42 = vadd.f32 %v1046_v39, %v1676_v5  ;;  %v765_v61 = vpop.f32.mrb[47].mxu1  ;;  %v507_v43 = vpop.f32.mrb[47].mxu0 }
 0x1c9   : > { %v766_v57 = vadd.f32 %v765_v61, %v1674_v1 }
 0x1ca   : > { %797 = vst [vmem:[%s1679_s17 + $0xb8] sm:$0xff] %v731_v40  ;;  %805 = vst [vmem:[%s1679_s17 + $0xf8] sm:$0xff] %v771_v42 }
 0x1cb   : > { %804 = vst [vmem:[%s1679_s17 + $0xf0] sm:$0xff] %v766_v57 }
 0x1cc   : > { %1297 = shalt.err (!%p1294_p7)
}
 0x1cd   : > { %s1298_s24 = scalar_lea.hbm %s1722_s4, 4096  ;;  %s1302_s26 = scalar_lea.hbm %s1774_s2, 8192 }
 0x1ce   : > { %p1299_p9 = scmp.ne.s32.totalorder %s1722_s4, %s1298_s24  ;;  %p1303_p5 = scmp.lt.u32.totalorder %s1722_s4, %s1774_s2 }
 0x1cf   : > { %p1304_p11 = scmp.lt.u32.totalorder %s1302_s26, %s1298_s24  ;;  %p1306_p4 = scmp.lt.u32.totalorder %s1298_s24, %s1722_s4 }
 0x1d0   : > { %p1300_p2 = pnand %p1299_p9, %p1472_p12 }
 0x1d1   : > { %p1305_p1 = por %p1304_p11, %p1303_p5 }
 0x1d2   : > { %p1301_p0 = pneg %p1300_p2 }
 0x1d3   : > { %p1307_p6 = por %p1306_p4, %p1305_p1 }
 0x1d5   : > { %p1308_p8 = pnand %p1307_p6, %p1301_p0 }
 0x1d7   : > { %1311 = shalt.err (!%p1308_p8)
}
 0x1d8   : > { %s1364_s3 = smov 128   ;;  %s1365_s15 = smov 8  }
 0x1d9   : > { %1168 = dma.vmem_to_hbm [thread:$0]  (%p1472_p12), %s1724_s19, 4096, %s1722_s4, %s807_s13, %s1364_s3, %s1364_s3, %s1365_s15  }
 0x1da PF: > { %s835_s17 = sand.u32 1, %s1342_s9   ;;  %p1789_p10 = scmp.ne.s32.totalorder %s1779_s16, 0 }
 0x1db   : > { %p1790_p13 = scmp.ge.s32.totalorder %s1354_s12, 2  ;;  %s836_s27 = scalar_lea.sflag [#allocation4], %s835_s17 }
 0x1dd   : > { %p1179_p3 = pnand %p1790_p13, %p1789_p10 }
 0x1df   : > { %1337 = dma.done.wait (!%p1179_p3), %s836_s27, 4096  }
 0x1e0   : > { %1339 = vsyncadd (!%p1179_p3), %s836_s27, 4294963200  ;;  %p16_p7 = scmp.ge.s32.totalorder %s1437_s21, 4   ;;  %s1791_s9 = smov %s1346_s10 }
 0x1e1   : > { %s1792_s10 = smov %s1350_s11  ;;  %s1793_s11 = smov %s1468_s8 }
 0x1e2   : > { %s1794_s12 = smov %s1437_s21  ;;  %18 = sbr.rel (!%p16_p7) target bundleno = 6 (0x6), region = 77 }
 0x1e9   :  { %841 = vsyncpa [#allocation3], 1 }
 0x1ea   :  { %843 = vsyncpa [#allocation3 + $0x1], 1 }
 0x1eb   :  { %844 = vsyncpa [#allocation6], 1 }
 0x1ec   :  { %845 = vsyncpa [#allocation4], 1 }
 0x1ed   :  { %847 = vsyncpa [#allocation4 + $0x1], 1 }

</bundles_post_ra>
